<compile_context>
chip_gen: v7x
topology: tpu7x:2x2x1
jax: 0.10.0
libtpu: 0.0.40
codegen_flags: <defaults>
</compile_context>

<pallas_src>
import functools

import jax
import jax.numpy as jnp
from jax.experimental import pallas as pl
from jax.experimental.pallas import tpu as pltpu


def _pow_int(x, n):
    """x ** n for small positive integer n via repeated VPU multiplies (no EUP pow)."""
    r = None
    b = x
    while True:
        if n & 1:
            r = b if r is None else r * b
        n >>= 1
        if n == 0:
            return r
        b = b * b


def _pow_static(x, p):
    if float(p) == int(p) and int(p) >= 1:
        return _pow_int(x, int(p))
    return x ** p  # non-integer p: fall back to pow


def _root_static(v, p):
    p = float(p)
    if p == 4.0:
        return jnp.sqrt(jnp.sqrt(v))
    if p == 2.0:
        return jnp.sqrt(v)
    if p == 1.0:
        return v
    return v ** (1.0 / p)


def _gem_partial_kernel(feat_ref, psum_ref, acc_ref, *,
                        p, gem_eps, t_hw, hw, n_k, need_mask):
    """Accumulate sum over spatial of clamp(x, eps)^p for one (split, batch-block)."""
    k = pl.program_id(2)

    @pl.when(k == 0)
    def _():
        acc_ref[...] = jnp.zeros_like(acc_ref)

    x = feat_ref[...].astype(jnp.float32)                 # (tb, C, t_hw)
    xp = _pow_static(jnp.maximum(x, gem_eps), p)
    if need_mask:
        # Ragged tail / clamped out-of-range tiles: zero lanes whose logical spatial
        # offset is >= H*W (pure VPU filler, hidden under the DMA).
        s = pl.program_id(0)
        off = (s * n_k + k) * t_hw
        lane = jax.lax.broadcasted_iota(jnp.int32, (1, 1, t_hw), 2)
        xp = jnp.where(lane + off < hw, xp, 0.0)
    acc_ref[...] += jnp.sum(xp, axis=-1)                  # (tb, C)

    @pl.when(k == pl.num_programs(2) - 1)
    def _():
        psum_ref[...] = acc_ref[...][None]                # (1, tb, C)


def _head_finalize_kernel(psum_ref, w_ref, b_ref, out_ref, *, p, inv_hw, norm_eps):
    """Reduce spatial-split partials, GeM 1/p root, BN-folded FC, L2 normalize."""
    ps = jnp.sum(psum_ref[...], axis=0)                   # (fb, C) sum over splits
    pooled = _root_static(ps * inv_hw, p)                 # GeM mean + root
    y = jnp.dot(pooled, w_ref[...], preferred_element_type=jnp.float32) + b_ref[...]
    ssq = jnp.sum(y * y, axis=-1, keepdims=True)
    # F.normalize: y / max(||y||, eps)  ==  y * rsqrt(max(||y||^2, eps^2))  (EUP rsqrt)
    out_ref[...] = (y * jax.lax.rsqrt(jnp.maximum(ssq, norm_eps * norm_eps))
                    ).astype(out_ref.dtype)


def _choose_tiles(B, C, HW, itemsize, max_tile_bytes):
    # Batch block: 8 rows (sublane tile of the (tb, C) partial) when possible, else the
    # full batch. tb cannot go below 8 unless it equals the full batch dim (it is the
    # second-to-last dim of the partial-sum output block), so the spatial tile -- not
    # tb -- absorbs the VMEM budget.
    if B <= 8:
        tb, b_pad = B, B
    else:
        tb = 8
        b_pad = ((B + 7) // 8) * 8   # ragged big batch: pad rows are dropped after finalize
    n_b = b_pad // tb

    # Spatial tile: whole extent if it fits the budget; otherwise the largest multiple of
    # 128 within it (long contiguous DMA rows beat a bigger batch block).
    if tb * C * HW * itemsize <= max_tile_bytes or HW <= 128:
        t_hw = HW
    else:
        cap = max(128, (max_tile_bytes // (tb * C * itemsize)) // 128 * 128)
        t_hw = min(cap, (HW // 128) * 128)
    n_k_total = pl.cdiv(HW, t_hw)
    return tb, b_pad, n_b, t_hw, n_k_total


def _default_budgets(max_tile_bytes, vmem_limit_bytes):
    """v7x-safe defaults (64 MiB VMEM / TensorCore); bigger tiles on 128-MiB chips."""
    mtb, vlb = 8 * 1024 * 1024, 48 * 1024 * 1024
    try:
        kind = jax.devices()[0].device_kind.lower()
        if any(t in kind for t in ("v4", "v5", "v6")):
            mtb, vlb = 16 * 1024 * 1024, 80 * 1024 * 1024
    except Exception:
        pass
    return (mtb if max_tile_bytes is None else max_tile_bytes,
            vlb if vmem_limit_bytes is None else vmem_limit_bytes)


def iscnet_head(feat, fc_w, bn_gamma, bn_beta, bn_mean, bn_var, *,
                p=4.0, gem_eps=1e-6, bn_eps=1e-5, norm_eps=1e-12,
                max_tile_bytes=None, vmem_limit_bytes=None):
    """ISCNet head.

    feat : (B, C, H*W) backbone feature map (any float dtype; bf16 recommended).
    fc_w : (C, F) == torch fc.weight.T (fc has no bias).
    bn_* : (F,) or (1, F) eval-mode BatchNorm1d params / running stats.
    Returns the (B, F) float32 L2-normalized descriptor.
    """
    B, C, HW = feat.shape
    Cw, F = fc_w.shape
    assert Cw == C

    max_tile_bytes, vmem_limit_bytes = _default_budgets(max_tile_bytes, vmem_limit_bytes)

    # Fold eval-mode BatchNorm into the FC weight/bias (host side, once):
    #   bn(x @ W) = (x @ W - mean) * gamma / sqrt(var+eps) + beta = x @ (W*s) + (beta - mean*s)
    scale = bn_gamma.reshape(1, F).astype(jnp.float32) * jax.lax.rsqrt(
        bn_var.reshape(1, F).astype(jnp.float32) + bn_eps)
    w_eff = fc_w.astype(jnp.float32) * scale                                   # (C, F)
    b_eff = (bn_beta.reshape(1, F).astype(jnp.float32)
             - bn_mean.reshape(1, F).astype(jnp.float32) * scale)              # (1, F)

    itemsize = jnp.dtype(feat.dtype).itemsize
    tb, b_pad, n_b, t_hw, n_k_total = _choose_tiles(B, C, HW, itemsize, max_tile_bytes)

    # 2-way spatial split on the leading "parallel" axis when there are <2 batch blocks,
    # so both v7x TensorCores stream HBM even at small batch.
    n_split = 2 if (n_b < 2 and n_k_total >= 2) else 1
    n_k = pl.cdiv(n_k_total, n_split)
    need_mask = (n_split * n_k * t_hw) != HW
    last_tile = n_k_total - 1

    gem_kernel = functools.partial(
        _gem_partial_kernel, p=float(p), gem_eps=float(gem_eps),
        t_hw=t_hw, hw=HW, n_k=n_k, need_mask=need_mask)

    # ---- kernel 1: streaming GeM partial sums -> (n_split, b_pad, C) f32 ------------
    psum = pl.pallas_call(
        gem_kernel,
        out_shape=jax.ShapeDtypeStruct((n_split, b_pad, C), jnp.float32),
        grid_spec=pltpu.PrefetchScalarGridSpec(
            num_scalar_prefetch=0,
            grid=(n_split, n_b, n_k),
            in_specs=[
                pl.BlockSpec(
                    (tb, C, t_hw),
                    lambda s, b, k: (b, 0, jnp.minimum(s * n_k + k, last_tile)),
                ),
            ],
            out_specs=pl.BlockSpec((1, tb, C), lambda s, b, k: (s, b, 0)),
            scratch_shapes=[pltpu.VMEM((tb, C), jnp.float32)],
        ),
        compiler_params=pltpu.CompilerParams(
            dimension_semantics=("parallel", "parallel", "arbitrary"),
            vmem_limit_bytes=vmem_limit_bytes,
        ),
    )(feat)

    # ---- kernel 2: split-reduce + root + folded FC + L2 normalize (batched matmul) --
    fb = b_pad if b_pad <= 256 else 256
    n_fb = pl.cdiv(b_pad, fb)

    fin_kernel = functools.partial(
        _head_finalize_kernel, p=float(p), inv_hw=1.0 / float(HW),
        norm_eps=float(norm_eps))

    out = pl.pallas_call(
        fin_kernel,
        out_shape=jax.ShapeDtypeStruct((b_pad, F), jnp.float32),
        grid_spec=pltpu.PrefetchScalarGridSpec(
            num_scalar_prefetch=0,
            grid=(n_fb,),
            in_specs=[
                pl.BlockSpec((n_split, fb, C), lambda b: (0, b, 0)),
                pl.BlockSpec((C, F), lambda b: (0, 0)),
                pl.BlockSpec((1, F), lambda b: (0, 0)),
            ],
            out_specs=pl.BlockSpec((fb, F), lambda b: (b, 0)),
        ),
        compiler_params=pltpu.CompilerParams(
            dimension_semantics=("parallel",),
            vmem_limit_bytes=vmem_limit_bytes,
        ),
    )(psum, w_eff, b_eff)

    return out if b_pad == B else out[:B]


def _reference(feat, fc_w, gamma, beta, mean, var, *, p, gem_eps=1e-6, bn_eps=1e-5):
    x = jnp.mean(jnp.maximum(feat, gem_eps) ** p, axis=-1) ** (1.0 / p)
    y = x @ fc_w
    y = (y - mean) / jnp.sqrt(var + bn_eps) * gamma + beta
    return y / jnp.maximum(jnp.linalg.norm(y, axis=-1, keepdims=True), 1e-12)


if __name__ == "__main__":
    B, C = 2, 32
    fc_dim = 64
    eval_p = 4.0            # module is in eval mode -> uses eval_p

    key = jax.random.PRNGKey(0)
    k_a, k_b, k_fc = jax.random.split(key, 3)

    # Deterministic params mirroring _init_params(): fc xavier_normal_ (no bias),
    # BatchNorm1d weight=1 / bias=0, fresh running stats (mean=0, var=1), eval mode.
    xavier_std = (2.0 / (C + fc_dim)) ** 0.5
    fc_weight_t = jax.random.normal(k_fc, (C, fc_dim), dtype=jnp.float32) * xavier_std
    bn_gamma = jnp.ones((1, fc_dim), jnp.float32)
    bn_beta = jnp.zeros((1, fc_dim), jnp.float32)
    bn_mean = jnp.zeros((1, fc_dim), jnp.float32)
    bn_var = jnp.ones((1, fc_dim), jnp.float32)

    # (a) backbone map (B, C, H, W) = (2, 32, 16, 16): single spatial tile, no split.
    H, W = 16, 16
    feat_a = jax.random.normal(k_a, (B, C, H * W), jnp.float32).astype(jnp.bfloat16)
    out_a = jax.block_until_ready(
        iscnet_head(feat_a, fc_weight_t, bn_gamma, bn_beta, bn_mean, bn_var, p=eval_p))
    ref_a = _reference(feat_a.astype(jnp.float32), fc_weight_t, bn_gamma, bn_beta,
                       bn_mean, bn_var, p=eval_p)
    assert out_a.shape == (B, fc_dim)
    assert jnp.allclose(out_a, ref_a, atol=5e-3, rtol=5e-3), "case (a) mismatch"

    # (b) ragged spatial extent (H, W) = (15, 20) with a tiny tile budget: exercises the
    #     2-way spatial split, the in-kernel tail mask and the clamped out-of-range tile.
    H2, W2 = 15, 20
    feat_b = jax.random.normal(k_b, (B, C, H2 * W2), jnp.float32).astype(jnp.bfloat16)
    out_b = jax.block_until_ready(
        iscnet_head(feat_b, fc_weight_t, bn_gamma, bn_beta, bn_mean, bn_var, p=eval_p,
                    max_tile_bytes=16 * 1024))
    ref_b = _reference(feat_b.astype(jnp.float32), fc_weight_t, bn_gamma, bn_beta,
                       bn_mean, bn_var, p=eval_p)
    assert out_b.shape == (B, fc_dim)
    assert jnp.allclose(out_b, ref_b, atol=5e-3, rtol=5e-3), "case (b) mismatch"

    print("KERNEL_OK")
</pallas_src>

<mosaic_0001>
module attributes {stable_mosaic.version = 11 : i64} {
  func.func @_gem_partial_kernel(%arg0: i32, %arg1: i32, %arg2: i32, %arg3: memref<2x32x256xbf16, #tpu.memory_space<vmem>>, %arg4: memref<1x2x32xf32, #tpu.memory_space<vmem>>, %arg5: memref<2x32xf32, #tpu.memory_space<vmem>>) attributes {dimension_semantics = [#tpu.dimension_semantics<parallel>, #tpu.dimension_semantics<parallel>, #tpu.dimension_semantics<arbitrary>], iteration_bounds = array<i64: 1, 1, 1>, scalar_prefetch = 0 : i64, scratch_operands = 1 : i64, tpu.core_type = #tpu.core_type<tc>, window_params = [{transform_indices = @transform_0, window_bounds = array<i64: 2, 32, 256>}, {transform_indices = @transform_1, window_bounds = array<i64: 1, 2, 32>}]} {
    %c0_i32 = arith.constant 0 : i32
    %0 = arith.cmpi eq, %arg2, %c0_i32 : i32
    %1 = arith.extui %0 : i1 to i32
    %c0_i32_0 = arith.constant 0 : i32
    %2 = arith.cmpi ne, %1, %c0_i32_0 : i32
    scf.if %2 {
      %cst_10 = arith.constant 0.000000e+00 : f32
      %16 = vector.broadcast %cst_10 : f32 to vector<2x32xf32>
      %c0_11 = arith.constant 0 : index
      %c0_12 = arith.constant 0 : index
      %17 = vector.load %arg5[%c0_11, %c0_12] : memref<2x32xf32, #tpu.memory_space<vmem>>, vector<2x32xf32>
      tpu.vector_store %arg5[%c0_11, %c0_12], %16 {strides = array<i32>} : memref<2x32xf32, #tpu.memory_space<vmem>>, vector<2x32xf32>,
    } else {
    }
    %c0 = arith.constant 0 : index
    %c0_1 = arith.constant 0 : index
    %c0_2 = arith.constant 0 : index
    %3 = vector.load %arg3[%c0, %c0_1, %c0_2] : memref<2x32x256xbf16, #tpu.memory_space<vmem>>, vector<2x32x256xbf16>
    %4 = arith.extf %3 : vector<2x32x256xbf16> to vector<2x32x256xf32>
    %cst = arith.constant 9.99999997E-7 : f32
    %5 = vector.broadcast %cst : f32 to vector<2x32x256xf32>
    %6 = arith.maximumf %4, %5 : vector<2x32x256xf32>
    %7 = arith.mulf %6, %6 : vector<2x32x256xf32>
    %8 = arith.mulf %7, %7 : vector<2x32x256xf32>
    %c0_3 = arith.constant 0 : index
    %c0_4 = arith.constant 0 : index
    %9 = vector.load %arg5[%c0_3, %c0_4] : memref<2x32xf32, #tpu.memory_space<vmem>>, vector<2x32xf32>
    %cst_5 = arith.constant dense<0.000000e+00> : vector<2x32xf32>
    %10 = vector.multi_reduction <add>, %8, %cst_5 [2] : vector<2x32x256xf32> to vector<2x32xf32>
    %11 = arith.addf %9, %10 : vector<2x32xf32>
    %c0_6 = arith.constant 0 : index
    %c0_7 = arith.constant 0 : index
    %12 = vector.load %arg5[%c0_6, %c0_7] : memref<2x32xf32, #tpu.memory_space<vmem>>, vector<2x32xf32>
    tpu.vector_store %arg5[%c0_6, %c0_7], %11 {strides = array<i32>} : memref<2x32xf32, #tpu.memory_space<vmem>>, vector<2x32xf32>,
    %c0_i32_8 = arith.constant 0 : i32
    %13 = arith.cmpi eq, %arg2, %c0_i32_8 : i32
    %14 = arith.extui %13 : i1 to i32
    %c0_i32_9 = arith.constant 0 : i32
    %15 = arith.cmpi ne, %14, %c0_i32_9 : i32
    scf.if %15 {
      %c0_10 = arith.constant 0 : index
      %c0_11 = arith.constant 0 : index
      %16 = vector.load %arg5[%c0_10, %c0_11] : memref<2x32xf32, #tpu.memory_space<vmem>>, vector<2x32xf32>
      %17 = vector.shape_cast %16 : vector<2x32xf32> to vector<1x2x32xf32>
      %c0_12 = arith.constant 0 : index
      %c0_13 = arith.constant 0 : index
      %c0_14 = arith.constant 0 : index
      %18 = vector.load %arg4[%c0_12, %c0_13, %c0_14] : memref<1x2x32xf32, #tpu.memory_space<vmem>>, vector<1x2x32xf32>
      tpu.vector_store %arg4[%c0_12, %c0_13, %c0_14], %17 {strides = array<i32>} : memref<1x2x32xf32, #tpu.memory_space<vmem>>, vector<1x2x32xf32>,
    } else {
    }
    return
  }
  func.func @transform_0(%arg0: i32, %arg1: i32, %arg2: i32) -> (i32, i32, i32) {
    %c1_i32 = arith.constant 1 : i32
    %0 = arith.muli %arg0, %c1_i32 : i32
    %1 = arith.addi %0, %arg2 : i32
    %c0_i32 = arith.constant 0 : i32
    %2 = arith.minsi %1, %c0_i32 : i32
    %c0_i32_0 = arith.constant 0 : i32
    %c0_i32_1 = arith.constant 0 : i32
    return %arg1, %c0_i32_0, %2 : i32, i32, i32
  }
  func.func @transform_1(%arg0: i32, %arg1: i32, %arg2: i32) -> (i32, i32, i32) {
    %c0_i32 = arith.constant 0 : i32
    %c0_i32_0 = arith.constant 0 : i32
    return %arg0, %arg1, %c0_i32 : i32, i32, i32
  }
}

</mosaic_0001>

<bundles_post_ra>
// kernel: tpu_custom_call.1
= control target key start
LH: loop header
LB: loop body
LE: loop exit
PB: predicated region body
PF: predicated region fallthrough
CT: control target
= control target key end

     0   :  { %6 = vsyncpa [#allocation4], 0  ;;  %s313_s0 = inlined_call_operand.hbm [shape: bf16[2,32,256], index: 0, kind: input, shape index: {}]   ;;  %s314_s1 = inlined_call_operand.hbm [shape: f32[1,2,32], index: 1, kind: output, shape index: {}]  }
   0x1   :  { %7 = vsyncpa [#allocation5], 0  ;;  %s271_s6 = smov [#allocation3]   ;;  %s223_s10 = scalar_lea.hbm %s313_s0, 1024 }
   0x2   :  { %s19_s7 = sshll.u32 %s271_s6, 4  ;;  %p224_p0 = scmp.ne.s32.totalorder %s313_s0, %s223_s10  ;;  %s20_s7 = int_to_ptr.vmem [resolvable:$true] %s19_s7 }
   0x3   :  { %p227_p1 = scmp.lt.u32.totalorder %s223_s10, %s313_s0 }
   0x5   :  { %p229_p2 = pnand %p227_p1, %p224_p0 }
   0x7   :  { %232 = shalt.err (!%p229_p2)
}
   0x8   :  { %s233_s15 = scalar_lea.vmem %s20_s7, 1024  ;;  %p238_p4 = scmp.lt.s32.totalorder %s20_s7, %s20_s7 }
   0x9   :  { %p234_p3 = scmp.ne.s32.totalorder %s20_s7, %s233_s15  ;;  %p239_p5 = scmp.lt.s32.totalorder %s233_s15, %s233_s15 }
   0xb   :  { %p240_p6 = por %p239_p5, %p238_p4 }
   0xd   :  { %p241_p7 = pnand %p240_p6, %p234_p3 }
   0xf   :  { %244 = shalt.err (!%p241_p7)
}
  0x10   :  { %s272_s16 = smov 128   ;;  %s273_s17 = smov 8  }
  0x11   :  { %25 = dma.hbm_to_vmem [thread:$0]  %s313_s0, 1024, %s20_s7, [#allocation4], %s272_s16, %s272_s16, %s273_s17  }
  0x12   :  { %267 = dma.done.wait [#allocation4], 1024  }
  0x13   :  { %268 = vsyncadd [#allocation4], 4294966272  ;;  %v43_v0 = vld [vmem:[#allocation3 + $0x20] sm:$0xff]  ;;  %v44_v2 = vld [vmem:[#allocation3 + $0x28] sm:$0xff]  ;;  %vm37_vm0 = vcmask 254976   ;;  %vm155_vm1 = vcmask 130112  }
  0x14   :  { %v39_v1 = vld [vmem:[#allocation3] sm:$0xff]  ;;  %v55_v3 = vunpack.c.l.bf16 %v43_v0  ;;  %v56_v4 = vunpack.c.h.bf16 %v43_v0  ;;  %v40_v7 = vld [vmem:[#allocation3 + $0x8] sm:$0xff]  ;;  %v45_v8 = vld [vmem:[#allocation3 + $0x30] sm:$0xff]  ;;  %v57_v9 = vunpack.c.l.bf16 %v44_v2  ;;  %v58_v10 = vunpack.c.h.bf16 %v44_v2  ;;  %s275_s0 = smov [#allocation6]  }
  0x15   :  { %v47_v5 = vunpack.c.l.bf16 %v39_v1  ;;  %v48_v6 = vunpack.c.h.bf16 %v39_v1  ;;  %v49_v11 = vunpack.c.l.bf16 %v40_v7  ;;  %v50_v12 = vunpack.c.h.bf16 %v40_v7  ;;  %v41_v33 = vld [vmem:[#allocation3 + $0x10] sm:$0xff]  ;;  %v46_v38 = vld [vmem:[#allocation3 + $0x38] sm:$0xff]  ;;  %s207_s20 = sshll.u32 %s275_s0, 4  ;;  %s208_s20 = int_to_ptr.vmem [resolvable:$true] %s207_s20 }
  0x16   :  { %v71_v13 = vmax.f32 %v55_v3, 1e-06  ;;  %v72_v14 = vmax.f32 %v56_v4, 1e-06  ;;  %v59_v16 = vunpack.c.l.bf16 %v45_v8  ;;  %v73_v18 = vmax.f32 %v57_v9, 1e-06  ;;  %p250_p9 = scmp.lt.s32.totalorder %s208_s20, %s208_s20 }
  0x17   :  { %v63_v15 = vmax.f32 %v47_v5, 1e-06  ;;  %v64_v17 = vmax.f32 %v48_v6, 1e-06  ;;  %v74_v19 = vmax.f32 %v58_v10, 1e-06  ;;  %v60_v20 = vunpack.c.h.bf16 %v45_v8 }
  0x18   :  { %v87_v21 = vmul.f32 %v71_v13, %v71_v13  ;;  %v88_v22 = vmul.f32 %v72_v14, %v72_v14  ;;  %v65_v24 = vmax.f32 %v49_v11, 1e-06  ;;  %v89_v26 = vmul.f32 %v73_v18, %v73_v18  ;;  %v42_v43 = vld [vmem:[#allocation3 + $0x18] sm:$0xff]  ;;  %s245_s21 = scalar_lea.vmem %s208_s20, 32 }
  0x19   :  { %v79_v23 = vmul.f32 %v63_v15, %v63_v15  ;;  %v80_v25 = vmul.f32 %v64_v17, %v64_v17  ;;  %v90_v27 = vmul.f32 %v74_v19, %v74_v19  ;;  %v66_v28 = vmax.f32 %v50_v12, 1e-06  ;;  %p246_p8 = scmp.ne.s32.totalorder %s208_s20, %s245_s21  ;;  %p251_p10 = scmp.lt.s32.totalorder %s245_s21, %s245_s21 }
  0x1a   :  { %v103_v29 = vmul.f32 %v87_v21, %v87_v21  ;;  %v104_v30 = vmul.f32 %v88_v22, %v88_v22  ;;  %v81_v32 = vmul.f32 %v65_v24, %v65_v24  ;;  %v105_v35 = vmul.f32 %v89_v26, %v89_v26 }
  0x1b   :  { %v95_v31 = vmul.f32 %v79_v23, %v79_v23  ;;  %v96_v34 = vmul.f32 %v80_v25, %v80_v25  ;;  %v106_v36 = vmul.f32 %v90_v27, %v90_v27  ;;  %v82_v37 = vmul.f32 %v66_v28, %v66_v28  ;;  %p252_p11 = por %p251_p10, %p250_p9 }
  0x1c   :  { %v124_v39 = vadd.f32 %v104_v30, %v103_v29  ;;  %v97_v40 = vmul.f32 %v81_v32, %v81_v32  ;;  %v75_v41 = vmax.f32 %v59_v16, 1e-06  ;;  %v76_v42 = vmax.f32 %v60_v20, 1e-06 }
  0x1d   :  { %v112_v44 = vadd.f32 %v96_v34, %v95_v31  ;;  %v127_v45 = vadd.f32 %v106_v36, %v105_v35  ;;  %v98_v46 = vmul.f32 %v82_v37, %v82_v37  ;;  %v51_v47 = vunpack.c.l.bf16 %v41_v33  ;;  %p253_p12 = pnand %p252_p11, %p246_p8 }
  0x1e   :  { %125 = vadd.xlane.f32.xlu1 %v124_v39  ;;  %v91_v48 = vmul.f32 %v75_v41, %v75_v41  ;;  %v92_v49 = vmul.f32 %v76_v42, %v76_v42  ;;  %v52_v50 = vunpack.c.h.bf16 %v41_v33  ;;  %v61_v51 = vunpack.c.l.bf16 %v46_v38 }
  0x1f   :  { %113 = vadd.xlane.f32.xlu0 %v112_v44  ;;  %v115_v52 = vadd.f32 %v98_v46, %v97_v40  ;;  %v67_v53 = vmax.f32 %v51_v47, 1e-06  ;;  %v62_v54 = vunpack.c.h.bf16 %v46_v38  ;;  %v53_v55 = vunpack.c.l.bf16 %v42_v43 }
  0x20   :  { %v107_v56 = vmul.f32 %v91_v48, %v91_v48  ;;  %v108_v57 = vmul.f32 %v92_v49, %v92_v49  ;;  %v68_v58 = vmax.f32 %v52_v50, 1e-06  ;;  %v77_v59 = vmax.f32 %v61_v51, 1e-06 }
  0x21   :  { %v83_v60 = vmul.f32 %v67_v53, %v67_v53  ;;  %v78_v61 = vmax.f32 %v62_v54, 1e-06  ;;  %v54_v62 = vunpack.c.h.bf16 %v42_v43  ;;  %v69_v63 = vmax.f32 %v53_v55, 1e-06 }
  0x22   :  { %128 = vadd.xlane.f32.xlu1 %v127_v45  ;;  %v130_v0 = vadd.f32 %v108_v57, %v107_v56  ;;  %v84_v1 = vmul.f32 %v68_v58, %v68_v58  ;;  %v93_v2 = vmul.f32 %v77_v59, %v77_v59  ;;  %v274_v16 = vmov 0.0  }
  0x23   :  { %116 = vadd.xlane.f32.xlu0 %v115_v52  ;;  %v99_v3 = vmul.f32 %v83_v60, %v83_v60  ;;  %v94_v4 = vmul.f32 %v78_v61, %v78_v61  ;;  %v70_v5 = vmax.f32 %v54_v62, 1e-06  ;;  %v85_v6 = vmul.f32 %v69_v63, %v69_v63  ;;  %38 = vst.msk [vmem:[#allocation2] sm:$0x3] %vm37_vm0, %v274_v16 }
  0x24   :  { %v100_v7 = vmul.f32 %v84_v1, %v84_v1  ;;  %v109_v8 = vmul.f32 %v93_v2, %v93_v2  ;;  %v144_v17 = vlaneseq  ;;  %vm162_vm2 = vcmask 195712  }
  0x25   :  { %v110_v9 = vmul.f32 %v94_v4, %v94_v4  ;;  %v86_v10 = vmul.f32 %v70_v5, %v70_v5  ;;  %v101_v11 = vmul.f32 %v85_v6, %v85_v6  ;;  %vm169_vm3 = vcmask 261312  }
  0x26   :  { %131 = vadd.xlane.f32.xlu1 %v130_v0  ;;  %v118_v12 = vadd.f32 %v100_v7, %v99_v3  ;;  %v145_v18 = vand.u32 127, %v144_v17  ;;  %v147_v23 = vshrl.u32 %v144_v17, 7  ;;  %vm190_vm4 = vcmask 1041409  }
  0x27   :  { %v133_v13 = vadd.f32 %v110_v9, %v109_v8  ;;  %v102_v14 = vmul.f32 %v86_v10, %v86_v10 }
  0x28   :  { %119 = vadd.xlane.f32.xlu0 %v118_v12  ;;  %v150_v21 = vadd.s32 4294967288, %v145_v18  ;;  %v157_v22 = vadd.s32 4294967280, %v145_v18  ;;  %v164_v27 = vadd.s32 4294967272, %v145_v18  ;;  %v148_v29 = vsub.s32 %v145_v18, %v147_v23 }
  0x29   :  { %v121_v15 = vadd.f32 %v102_v14, %v101_v11 }
  0x2a   :  { %134 = vadd.xlane.f32.xlu1 %v133_v13  ;;  %v153_v25 = vsub.s32 %v150_v21, %v147_v23  ;;  %v160_v28 = vsub.s32 %v157_v22, %v147_v23  ;;  %v167_v32 = vsub.s32 %v164_v27, %v147_v23  ;;  %v111_v48 = vld [vmem:[#allocation2] sm:$0x3] }
  0x2c   :  { %122 = vadd.xlane.f32.xlu0 %v121_v15 }
  0xab   :  { %v126_v19 = vpop.xlane.xlu1 %125 }
  0xac   :  { %v114_v20 = vpop.xlane.xlu0 %113  ;;  %v174_v35 = vrot.slane %v126_v19, %v148_v29 }
  0xad   :  { %v149_v39 = vrot.slane %v114_v20, %v148_v29 }
  0xaf   :  { %v129_v24 = vpop.xlane.xlu1 %128 }
  0xb0   :  { %v117_v26 = vpop.xlane.xlu0 %116  ;;  %v178_v31 = vrot.slane %v129_v24, %v153_v25 }
  0xb1   :  { %v154_v36 = vrot.slane %v117_v26, %v153_v25 }
  0xb2   :  { %v179_v40 = vsel %vm155_vm1, %v178_v31, %v174_v35 }
  0xb3   :  { %v132_v30 = vpop.xlane.xlu1 %131  ;;  %v156_v44 = vsel %vm155_vm1, %v154_v36, %v149_v39 }
  0xb4   :  { %v183_v33 = vrot.slane %v132_v30, %v160_v28 }
  0xb5   :  { %v120_v34 = vpop.xlane.xlu0 %119 }
  0xb6   :  { %v161_v37 = vrot.slane %v120_v34, %v160_v28  ;;  %v184_v42 = vsel %vm162_vm2, %v183_v33, %v179_v40 }
  0xb7   :  { %v135_v38 = vpop.xlane.xlu1 %134 }
  0xb8   :  { %v188_v41 = vrot.slane %v135_v38, %v167_v32  ;;  %v163_v47 = vsel %vm162_vm2, %v161_v37, %v156_v44 }
  0xb9   :  { %v123_v43 = vpop.xlane.xlu0 %122 }
  0xba   :  { %v189_v45 = vsel %vm169_vm3, %v188_v41, %v184_v42  ;;  %v168_v46 = vrot.slane %v123_v43, %v167_v32 }
  0xbc   :  { %v170_v49 = vsel %vm169_vm3, %v168_v46, %v163_v47 }
  0xbd   :  { %v191_v50 = vsel %vm190_vm4, %v189_v45, %v170_v49 }
  0xbe   :  { %v193_v51 = vadd.f32 %v191_v50, %v111_v48 }
  0xc0   :  { %195 = vst.msk [vmem:[#allocation2] sm:$0x3] %vm37_vm0, %v193_v51 }
  0xc7   :  { %v199_v52 = vld [vmem:[#allocation2] sm:$0x3] }
  0xc8   :  { %200 = vst.msk [vmem:[#allocation6] sm:$0x3] %vm37_vm0, %v199_v52 }
  0xc9   :  { %256 = shalt.err (!%p253_p12)
}
  0xca   :  { %s257_s24 = scalar_lea.hbm %s314_s1, 32 }
  0xcb   :  { %p258_p13 = scmp.ne.s32.totalorder %s314_s1, %s257_s24  ;;  %p261_p0 = scmp.lt.u32.totalorder %s257_s24, %s314_s1 }
  0xcd   :  { %p263_p1 = pnand %p261_p0, %p258_p13 }
  0xcf   :  { %266 = shalt.err (!%p263_p1)
}
  0xd0   :  { %210 = dma.vmem_to_hbm [thread:$0]  %s208_s20, 32, %s314_s1, [#allocation5]  }
  0xd1   :  { %269 = dma.done.wait [#allocation5], 32  }
  0xd2   :  { %270 = vsyncadd [#allocation5], 4294967264 }
  0xd3   :  { %214 = vsyncpa [#allocation4], 1 }
  0xd4   :  { %215 = vsyncpa [#allocation5], 1 }

</bundles_post_ra>
